<compile_context>
chip_gen: v7x
topology: tpu7x:2x2x1
jax: 0.10.0
libtpu: 0.0.40
codegen_flags: <defaults>
</compile_context>

<pallas_src>
import math
from functools import partial

import numpy as np
import jax
import jax.numpy as jnp
from jax import lax
from jax.experimental import pallas as pl
from jax.experimental.pallas import tpu as pltpu

LANE = 128
HALF_LOG_2PI = 0.5 * math.log(2.0 * math.pi)


# --------------------------------------------------------------------------
# Kernel: fused 3-layer MLP slab + Normal log-prob, one lane-dense output.
# --------------------------------------------------------------------------
def _actor_critic_kernel(state_ref, act_ref, w1_ref, w23_ref, rows_ref, out_ref,
                         *, action_dim):
    x = state_ref[...]                     # [TB, S]
    a = act_ref[...]                       # [TB, P]  action in cols [0, A)
    rows = rows_ref[...]                   # [4, P] = (b1, b2, b3, logvar)
    b1 = rows[0:1, :]
    b2 = rows[1:2, :]
    b3 = rows[2:3, :]
    logvar = rows[3:4, :]

    # Fused 3-layer MLP: columns [actor | critic | global critic] (zero-padded).
    h = jnp.tanh(jnp.dot(x, w1_ref[...], preferred_element_type=jnp.float32) + b1)
    h = jnp.tanh(jnp.dot(h, w23_ref[0], preferred_element_type=jnp.float32) + b2)
    o = jnp.dot(h, w23_ref[1], preferred_element_type=jnp.float32) + b3      # [TB, P]

    # Actor head has a final Tanh; apply tanh to the whole slab (single EUP
    # pass) and only consume the first `action_dim` columns as the mean.
    mean = jnp.tanh(o)

    # Normal(mean, scale) with scale = exp(log_action_var) (matches PyTorch):
    #   log_prob = -(a-mean)^2 * exp(-2*logvar) / 2 - logvar - 0.5*log(2*pi)
    inv_var = jnp.exp(-2.0 * logvar)       # single EUP exp; replaces exp+sq+recip
    diff = a - mean
    logprob = -0.5 * diff * diff * inv_var - logvar - HALF_LOG_2PI

    # Lane-dense output: cols [0,A)=logprob, col A=state value, col A+1=global
    # value (raw, no tanh), remaining cols = don't-care padding.
    col = lax.broadcasted_iota(jnp.int32, out_ref.shape, 1)
    out_ref[...] = jnp.where(col < action_dim, logprob, o)


# --------------------------------------------------------------------------
# Wrapper
# --------------------------------------------------------------------------
def actor_critic_evaluate(state, action, packed, *, batch_tile=512):
    """state: [B, S], action: [B, A] -> (logprob, sval, gval, entropy)."""
    B, S = state.shape
    A = packed["action_dim"]
    P = packed["w1"].shape[1]

    # Lane-dense action slab (cols [0, A) hold the action, rest zero).
    act_pad = jnp.zeros((B, P), jnp.float32).at[:, :A].set(action.astype(jnp.float32))

    TB = B if B <= batch_tile else batch_tile
    grid = (pl.cdiv(B, TB),)

    out = pl.pallas_call(
        partial(_actor_critic_kernel, action_dim=A),
        out_shape=jax.ShapeDtypeStruct((B, P), jnp.float32),
        grid_spec=pltpu.PrefetchScalarGridSpec(
            num_scalar_prefetch=0,
            grid=grid,
            in_specs=[
                pl.BlockSpec((TB, S), lambda i: (i, 0)),       # state
                pl.BlockSpec((TB, P), lambda i: (i, 0)),       # padded action
                pl.BlockSpec((S, P), lambda i: (0, 0)),        # fused W1
                pl.BlockSpec((2, P, P), lambda i: (0, 0, 0)),  # fused W2|W3
                pl.BlockSpec((4, P), lambda i: (0, 0)),        # b1,b2,b3,logvar
            ],
            out_specs=pl.BlockSpec((TB, P), lambda i: (i, 0)),
        ),
        compiler_params=pltpu.CompilerParams(dimension_semantics=("parallel",)),
    )(state, act_pad, packed["w1"], packed["w23"], packed["rows"])

    logprob = out[:, :A]
    sval = out[:, A:A + 1]
    gval = out[:, A + 1:A + 2]
    # Entropy depends only on logvar (per-call constant row) -> wrapper.
    entropy = jnp.broadcast_to(0.5 + HALF_LOG_2PI + packed["logvar"], (B, A))
    return logprob, sval, gval, entropy


# --------------------------------------------------------------------------
# Parameter construction + host-side fused packing
# --------------------------------------------------------------------------
def init_params(key, state_dim, action_dim, actor_hidden, critic_hidden, action_std):
    def linear(k, fan_in, fan_out):
        # PyTorch Linear default init: U(-1/sqrt(fan_in), 1/sqrt(fan_in)).
        k1, k2 = jax.random.split(k)
        bound = 1.0 / math.sqrt(fan_in)
        w = jax.random.uniform(k1, (fan_in, fan_out), jnp.float32, -bound, bound)  # pre-transposed
        b = jax.random.uniform(k2, (1, fan_out), jnp.float32, -bound, bound)
        return w, b

    keys = jax.random.split(key, 10)
    dims_a = [(state_dim, actor_hidden), (actor_hidden, actor_hidden), (actor_hidden, action_dim)]
    dims_c = [(state_dim, critic_hidden), (critic_hidden, critic_hidden), (critic_hidden, 1)]
    actor = [linear(k, fi, fo) for (fi, fo), k in zip(dims_a, keys[0:3])]
    critic = [linear(k, fi, fo) for (fi, fo), k in zip(dims_c, keys[3:6])]
    gcritic = [linear(k, fi, fo) for (fi, fo), k in zip(dims_c, keys[6:9])]
    # log_action_var = rand(action_dim)/100 + action_std   (nn.Parameter init)
    logvar = jax.random.uniform(keys[9], (1, action_dim), jnp.float32) / 100.0 + action_std
    return {"actor": actor, "critic": critic, "global": gcritic, "logvar": logvar}


def pack_params(params, state_dim, action_dim, actor_hidden, critic_hidden):
    """Fuse the 3 MLPs into block-diagonal 128-lane-padded slabs (done once)."""
    A, Ha, Hc, P = action_dim, actor_hidden, critic_hidden, LANE
    HF = Ha + 2 * Hc
    assert HF <= P and A + 2 <= P, "fused width must fit one 128-lane slab"

    def n(x):
        return np.asarray(x, dtype=np.float32)

    (aw1, ab1), (aw2, ab2), (aw3, ab3) = params["actor"]
    (cw1, cb1), (cw2, cb2), (cw3, cb3) = params["critic"]
    (gw1, gb1), (gw2, gb2), (gw3, gb3) = params["global"]

    # Layer 1: [S, P], column blocks [actor | critic | global], zero padded.
    w1 = np.zeros((state_dim, P), np.float32)
    w1[:, 0:Ha] = n(aw1); w1[:, Ha:Ha + Hc] = n(cw1); w1[:, Ha + Hc:HF] = n(gw1)
    b1 = np.zeros((1, P), np.float32)
    b1[:, 0:Ha] = n(ab1); b1[:, Ha:Ha + Hc] = n(cb1); b1[:, Ha + Hc:HF] = n(gb1)

    # Layer 2: block-diagonal [P, P].
    w2 = np.zeros((P, P), np.float32)
    w2[0:Ha, 0:Ha] = n(aw2)
    w2[Ha:Ha + Hc, Ha:Ha + Hc] = n(cw2)
    w2[Ha + Hc:HF, Ha + Hc:HF] = n(gw2)
    b2 = np.zeros((1, P), np.float32)
    b2[:, 0:Ha] = n(ab2); b2[:, Ha:Ha + Hc] = n(cb2); b2[:, Ha + Hc:HF] = n(gb2)

    # Layer 3: block-rectangular [P, P]; out cols [0,A)=mean, A=sval, A+1=gval.
    w3 = np.zeros((P, P), np.float32)
    w3[0:Ha, 0:A] = n(aw3)
    w3[Ha:Ha + Hc, A:A + 1] = n(cw3)
    w3[Ha + Hc:HF, A + 1:A + 2] = n(gw3)
    b3 = np.zeros((1, P), np.float32)
    b3[:, 0:A] = n(ab3); b3[:, A:A + 1] = n(cb3); b3[:, A + 1:A + 2] = n(gb3)

    logvar_pad = np.zeros((1, P), np.float32)
    logvar_pad[:, 0:A] = n(params["logvar"])

    return {
        "w1": jnp.asarray(w1),                                       # [S, P]
        "w23": jnp.asarray(np.stack([w2, w3], axis=0)),              # [2, P, P]
        "rows": jnp.asarray(np.concatenate([b1, b2, b3, logvar_pad], axis=0)),  # [4, P]
        "logvar": jnp.asarray(n(params["logvar"])),                  # [1, A]
        "action_dim": A,
    }


# --------------------------------------------------------------------------
# Pure-JAX reference (correctness check only)
# --------------------------------------------------------------------------
def reference_evaluate(state, action, params):
    def mlp3(x, layers, final_tanh):
        (w1, b1), (w2, b2), (w3, b3) = layers
        h = jnp.tanh(x @ w1 + b1)
        h = jnp.tanh(h @ w2 + b2)
        o = h @ w3 + b3
        return jnp.tanh(o) if final_tanh else o

    mean = mlp3(state, params["actor"], True)
    sval = mlp3(state, params["critic"], False)
    gval = mlp3(state, params["global"], False)
    scale = jnp.exp(params["logvar"])
    logprob = (-((action - mean) ** 2) / (2.0 * scale ** 2)
               - jnp.log(scale) - HALF_LOG_2PI)
    entropy = jnp.broadcast_to(0.5 + HALF_LOG_2PI + jnp.log(scale), logprob.shape)
    return logprob, sval, gval, entropy


if __name__ == "__main__":
    B, STATE_DIM, ACTION_DIM = 8, 16, 4
    ACTOR_HIDDEN, CRITIC_HIDDEN = 32, 32
    ACTION_STD = 0.6

    key = jax.random.PRNGKey(0)
    k_p, k_s, k_a = jax.random.split(key, 3)

    params = init_params(k_p, STATE_DIM, ACTION_DIM, ACTOR_HIDDEN, CRITIC_HIDDEN, ACTION_STD)
    packed = pack_params(params, STATE_DIM, ACTION_DIM, ACTOR_HIDDEN, CRITIC_HIDDEN)

    state = jax.random.normal(k_s, (B, STATE_DIM), jnp.float32)
    action = jax.random.normal(k_a, (B, ACTION_DIM), jnp.float32)

    outs = actor_critic_evaluate(state, action, packed)
    outs = jax.block_until_ready(outs)

    refs = reference_evaluate(state, action, params)
    for o, r in zip(outs, refs):
        np.testing.assert_allclose(np.asarray(o), np.asarray(r), rtol=2e-5, atol=2e-5)

    print("KERNEL_OK")
</pallas_src>

<mosaic_0001>
module attributes {stable_mosaic.version = 11 : i64} {
  func.func @_actor_critic_kernel(%arg0: i32, %arg1: memref<8x16xf32, #tpu.memory_space<vmem>>, %arg2: memref<8x128xf32, #tpu.memory_space<vmem>>, %arg3: memref<16x128xf32, #tpu.memory_space<vmem>>, %arg4: memref<2x128x128xf32, #tpu.memory_space<vmem>>, %arg5: memref<4x128xf32, #tpu.memory_space<vmem>>, %arg6: memref<8x128xf32, #tpu.memory_space<vmem>>) attributes {dimension_semantics = [#tpu.dimension_semantics<parallel>], iteration_bounds = array<i64: 1>, scalar_prefetch = 0 : i64, scratch_operands = 0 : i64, tpu.core_type = #tpu.core_type<tc>, window_params = [{transform_indices = @transform_0, window_bounds = array<i64: 8, 16>}, {transform_indices = @transform_1, window_bounds = array<i64: 8, 128>}, {pipeline_mode = #tpu.pipeline_mode<synchronous>, transform_indices = @transform_2, window_bounds = array<i64: 16, 128>}, {pipeline_mode = #tpu.pipeline_mode<synchronous>, transform_indices = @transform_3, window_bounds = array<i64: 2, 128, 128>}, {pipeline_mode = #tpu.pipeline_mode<synchronous>, transform_indices = @transform_4, window_bounds = array<i64: 4, 128>}, {transform_indices = @transform_5, window_bounds = array<i64: 8, 128>}]} {
    %c0 = arith.constant 0 : index
    %c0_0 = arith.constant 0 : index
    %0 = vector.load %arg1[%c0, %c0_0] : memref<8x16xf32, #tpu.memory_space<vmem>>, vector<8x16xf32>
    %c0_1 = arith.constant 0 : index
    %c0_2 = arith.constant 0 : index
    %1 = vector.load %arg2[%c0_1, %c0_2] : memref<8x128xf32, #tpu.memory_space<vmem>>, vector<8x128xf32>
    %c0_3 = arith.constant 0 : index
    %c0_4 = arith.constant 0 : index
    %2 = vector.load %arg5[%c0_3, %c0_4] : memref<4x128xf32, #tpu.memory_space<vmem>>, vector<4x128xf32>
    %3 = vector.extract_strided_slice %2 {offsets = [0, 0], sizes = [1, 128], strides = [1, 1]} : vector<4x128xf32> to vector<1x128xf32>
    %4 = vector.extract_strided_slice %2 {offsets = [1, 0], sizes = [1, 128], strides = [1, 1]} : vector<4x128xf32> to vector<1x128xf32>
    %5 = vector.extract_strided_slice %2 {offsets = [2, 0], sizes = [1, 128], strides = [1, 1]} : vector<4x128xf32> to vector<1x128xf32>
    %6 = vector.extract_strided_slice %2 {offsets = [3, 0], sizes = [1, 128], strides = [1, 1]} : vector<4x128xf32> to vector<1x128xf32>
    %c0_5 = arith.constant 0 : index
    %c0_6 = arith.constant 0 : index
    %7 = vector.load %arg3[%c0_5, %c0_6] : memref<16x128xf32, #tpu.memory_space<vmem>>, vector<16x128xf32>
    %cst = arith.constant dense<0.000000e+00> : vector<8x128xf32>
    %8 = tpu.matmul %0, %7, %cst {dimension_numbers = #tpu.dot_dimension_numbers<[1], [0], [0], [1], [0, 0, 1, 1], [], []>} : vector<8x16xf32>, vector<16x128xf32>, vector<8x128xf32> -> vector<8x128xf32>
    %9 = vector.broadcast %3 : vector<1x128xf32> to vector<8x128xf32>
    %10 = arith.addf %8, %9 : vector<8x128xf32>
    %11 = math.tanh %10 : vector<8x128xf32>
    %c0_7 = arith.constant 0 : index
    %c0_8 = arith.constant 0 : index
    %c0_9 = arith.constant 0 : index
    %12 = vector.load %arg4[%c0_7, %c0_8, %c0_9] : memref<2x128x128xf32, #tpu.memory_space<vmem>>, vector<1x128x128xf32>
    %13 = vector.shape_cast %12 : vector<1x128x128xf32> to vector<128x128xf32>
    %cst_10 = arith.constant dense<0.000000e+00> : vector<8x128xf32>
    %14 = tpu.matmul %11, %13, %cst_10 {dimension_numbers = #tpu.dot_dimension_numbers<[1], [0], [0], [1], [0, 0, 1, 1], [], []>} : vector<8x128xf32>, vector<128x128xf32>, vector<8x128xf32> -> vector<8x128xf32>
    %15 = vector.broadcast %4 : vector<1x128xf32> to vector<8x128xf32>
    %16 = arith.addf %14, %15 : vector<8x128xf32>
    %17 = math.tanh %16 : vector<8x128xf32>
    %c1 = arith.constant 1 : index
    %c0_11 = arith.constant 0 : index
    %c0_12 = arith.constant 0 : index
    %18 = vector.load %arg4[%c1, %c0_11, %c0_12] : memref<2x128x128xf32, #tpu.memory_space<vmem>>, vector<1x128x128xf32>
    %19 = vector.shape_cast %18 : vector<1x128x128xf32> to vector<128x128xf32>
    %cst_13 = arith.constant dense<0.000000e+00> : vector<8x128xf32>
    %20 = tpu.matmul %17, %19, %cst_13 {dimension_numbers = #tpu.dot_dimension_numbers<[1], [0], [0], [1], [0, 0, 1, 1], [], []>} : vector<8x128xf32>, vector<128x128xf32>, vector<8x128xf32> -> vector<8x128xf32>
    %21 = vector.broadcast %5 : vector<1x128xf32> to vector<8x128xf32>
    %22 = arith.addf %20, %21 : vector<8x128xf32>
    %23 = math.tanh %22 : vector<8x128xf32>
    %cst_14 = arith.constant -2.000000e+00 : f32
    %24 = vector.broadcast %cst_14 : f32 to vector<1x128xf32>
    %25 = arith.mulf %24, %6 : vector<1x128xf32>
    %26 = math.exp %25 : vector<1x128xf32>
    %27 = arith.subf %1, %23 : vector<8x128xf32>
    %cst_15 = arith.constant -5.000000e-01 : f32
    %28 = vector.broadcast %cst_15 : f32 to vector<8x128xf32>
    %29 = arith.mulf %28, %27 : vector<8x128xf32>
    %30 = arith.mulf %29, %27 : vector<8x128xf32>
    %31 = vector.broadcast %26 : vector<1x128xf32> to vector<8x128xf32>
    %32 = arith.mulf %30, %31 : vector<8x128xf32>
    %33 = vector.broadcast %6 : vector<1x128xf32> to vector<8x128xf32>
    %34 = arith.subf %32, %33 : vector<8x128xf32>
    %cst_16 = arith.constant 0.918938517 : f32
    %35 = vector.broadcast %cst_16 : f32 to vector<8x128xf32>
    %36 = arith.subf %34, %35 : vector<8x128xf32>
    %37 = tpu.iota {dimensions = array<i32: 1>} : vector<8x128xi32>
    %c4_i32 = arith.constant 4 : i32
    %38 = vector.broadcast %c4_i32 : i32 to vector<8x128xi32>
    %39 = arith.cmpi slt, %37, %38 : vector<8x128xi32>
    %40 = arith.select %39, %36, %22 : vector<8x128xi1>, vector<8x128xf32>
    %c0_17 = arith.constant 0 : index
    %c0_18 = arith.constant 0 : index
    %41 = vector.load %arg6[%c0_17, %c0_18] : memref<8x128xf32, #tpu.memory_space<vmem>>, vector<8x128xf32>
    tpu.vector_store %arg6[%c0_17, %c0_18], %40 {strides = array<i32>} : memref<8x128xf32, #tpu.memory_space<vmem>>, vector<8x128xf32>,
    return
  }
  func.func @transform_0(%arg0: i32) -> (i32, i32) {
    %c0_i32 = arith.constant 0 : i32
    %c0_i32_0 = arith.constant 0 : i32
    return %arg0, %c0_i32 : i32, i32
  }
  func.func @transform_1(%arg0: i32) -> (i32, i32) {
    %c0_i32 = arith.constant 0 : i32
    %c0_i32_0 = arith.constant 0 : i32
    return %arg0, %c0_i32 : i32, i32
  }
  func.func @transform_2(%arg0: i32) -> (i32, i32) {
    %c0_i32 = arith.constant 0 : i32
    %c0_i32_0 = arith.constant 0 : i32
    %c0_i32_1 = arith.constant 0 : i32
    return %c0_i32, %c0_i32_0 : i32, i32
  }
  func.func @transform_3(%arg0: i32) -> (i32, i32, i32) {
    %c0_i32 = arith.constant 0 : i32
    %c0_i32_0 = arith.constant 0 : i32
    %c0_i32_1 = arith.constant 0 : i32
    %c0_i32_2 = arith.constant 0 : i32
    return %c0_i32, %c0_i32_0, %c0_i32_1 : i32, i32, i32
  }
  func.func @transform_4(%arg0: i32) -> (i32, i32) {
    %c0_i32 = arith.constant 0 : i32
    %c0_i32_0 = arith.constant 0 : i32
    %c0_i32_1 = arith.constant 0 : i32
    return %c0_i32, %c0_i32_0 : i32, i32
  }
  func.func @transform_5(%arg0: i32) -> (i32, i32) {
    %c0_i32 = arith.constant 0 : i32
    %c0_i32_0 = arith.constant 0 : i32
    return %arg0, %c0_i32 : i32, i32
  }
}

</mosaic_0001>

<bundles_post_ra>
// kernel: tpu_custom_call.1
= control target key start
LH: loop header
LB: loop body
LE: loop exit
PB: predicated region body
PF: predicated region fallthrough
CT: control target
= control target key end

     0   :  { %10 = vsyncpa [#allocation3], 0  ;;  %s804_s0 = inlined_call_operand.hbm [shape: f32[8,16], index: 0, kind: input, shape index: {}]   ;;  %s805_s1 = inlined_call_operand.hbm [shape: f32[8,128], index: 1, kind: input, shape index: {}]   ;;  %s806_s2 = inlined_call_operand.hbm [shape: f32[16,128], index: 2, kind: input, shape index: {}]   ;;  %s807_s3 = inlined_call_operand.hbm [shape: f32[2,128,128], index: 3, kind: input, shape index: {}]   ;;  %s808_s4 = inlined_call_operand.vmem [shape: f32[4,128], index: 4, kind: input, shape index: {}]   ;;  %s809_s5 = inlined_call_operand.hbm [shape: f32[8,128], index: 5, kind: output, shape index: {}]  }
   0x1   :  { %11 = vsyncpa [#allocation6], 0 }
   0x2   :  { %12 = vsyncpa [#allocation9], 0 }
   0x3   :  { %13 = vsyncpa [#allocation4], 0  ;;  %s681_s18 = smov [#allocation5]   ;;  %s682_s20 = smov [#allocation2]  }
   0x4   :  { %s30_s19 = sshll.u32 %s681_s18, 4  ;;  %s20_s21 = sshll.u32 %s682_s20, 4  ;;  %s31_s19 = int_to_ptr.vmem [resolvable:$true] %s30_s19  ;;  %s21_s21 = int_to_ptr.vmem [resolvable:$true] %s20_s21 }
   0x5   :  { %s563_s24 = scalar_lea.hbm %s805_s1, 128 }
   0x6   :  { %p564_p0 = scmp.ne.s32.totalorder %s805_s1, %s563_s24  ;;  %p567_p1 = scmp.lt.u32.totalorder %s563_s24, %s805_s1 }
   0x8   :  { %p569_p2 = pnand %p567_p1, %p564_p0 }
   0xa   :  { %572 = shalt.err (!%p569_p2)
}
   0xb   :  { %s573_s29 = scalar_lea.vmem %s31_s19, 128  ;;  %p578_p4 = scmp.lt.s32.totalorder %s31_s19, %s31_s19 }
   0xc   :  { %p574_p3 = scmp.ne.s32.totalorder %s31_s19, %s573_s29  ;;  %p579_p5 = scmp.lt.s32.totalorder %s573_s29, %s573_s29 }
   0xe   :  { %p580_p6 = por %p579_p5, %p578_p4 }
  0x10   :  { %p581_p7 = pnand %p580_p6, %p574_p3 }
  0x12   :  { %584 = shalt.err (!%p581_p7)
}
  0x13   :  { %33 = dma.hbm_to_vmem [thread:$0]  %s805_s1, 128, %s31_s19, [#allocation6]  }
  0x14   :  { %s585_s9 = scalar_lea.hbm %s804_s0, 128 }
  0x15   :  { %p586_p8 = scmp.ne.s32.totalorder %s804_s0, %s585_s9  ;;  %p589_p9 = scmp.lt.u32.totalorder %s585_s9, %s804_s0 }
  0x17   :  { %p591_p10 = pnand %p589_p9, %p586_p8 }
  0x19   :  { %594 = shalt.err (!%p591_p10)
}
  0x1a   :  { %s595_s14 = scalar_lea.vmem %s21_s21, 128  ;;  %p600_p12 = scmp.lt.s32.totalorder %s21_s21, %s21_s21 }
  0x1b   :  { %p596_p11 = scmp.ne.s32.totalorder %s21_s21, %s595_s14  ;;  %p601_p13 = scmp.lt.s32.totalorder %s595_s14, %s595_s14 }
  0x1d   :  { %p602_p0 = por %p601_p13, %p600_p12 }
  0x1f   :  { %p603_p1 = pnand %p602_p0, %p596_p11 }
  0x21   :  { %606 = shalt.err (!%p603_p1)
}
  0x22   :  { %23 = dma.hbm_to_vmem [thread:$0]  %s804_s0, 128, %s21_s21, [#allocation3]  }
  0x23   :  { %s683_s16 = smov [#allocation7]   ;;  %s607_s20 = scalar_lea.hbm %s806_s2, 256 }
  0x24   :  { %s39_s17 = sshll.u32 %s683_s16, 4  ;;  %p608_p2 = scmp.ne.s32.totalorder %s806_s2, %s607_s20  ;;  %s40_s17 = int_to_ptr.vmem [resolvable:$true] %s39_s17 }
  0x25   :  { %p611_p3 = scmp.lt.u32.totalorder %s607_s20, %s806_s2 }
  0x27   :  { %p613_p4 = pnand %p611_p3, %p608_p2 }
  0x29   :  { %616 = shalt.err (!%p613_p4)
}
  0x2a   :  { %s617_s26 = scalar_lea.vmem %s40_s17, 256  ;;  %p622_p6 = scmp.lt.s32.totalorder %s40_s17, %s40_s17 }
  0x2b   :  { %p618_p5 = scmp.ne.s32.totalorder %s40_s17, %s617_s26  ;;  %p623_p7 = scmp.lt.s32.totalorder %s617_s26, %s617_s26 }
  0x2d   :  { %p624_p8 = por %p623_p7, %p622_p6 }
  0x2f   :  { %p625_p9 = pnand %p624_p8, %p618_p5 }
  0x31   :  { %628 = shalt.err (!%p625_p9)
}
  0x32   :  { %s684_s0 = smov 128   ;;  %s685_s21 = smov 8  }
  0x33   :  { %45 = dma.hbm_to_vmem [thread:$0]  %s806_s2, 256, %s40_s17, [#allocation6], %s684_s0, %s684_s0, %s685_s21  }
  0x34   :  { %s686_s29 = smov [#allocation8]   ;;  %s629_s8 = scalar_lea.hbm %s807_s3, 4096 }
  0x35   :  { %s51_s30 = sshll.u32 %s686_s29, 4  ;;  %p630_p10 = scmp.ne.s32.totalorder %s807_s3, %s629_s8  ;;  %s52_s30 = int_to_ptr.vmem [resolvable:$true] %s51_s30 }
  0x36   :  { %p633_p11 = scmp.lt.u32.totalorder %s629_s8, %s807_s3 }
  0x38   :  { %p635_p12 = pnand %p633_p11, %p630_p10 }
  0x3a   :  { %638 = shalt.err (!%p635_p12)
}
  0x3b   :  { %s639_s13 = scalar_lea.vmem %s52_s30, 4096  ;;  %p644_p0 = scmp.lt.s32.totalorder %s52_s30, %s52_s30 }
  0x3c   :  { %p640_p13 = scmp.ne.s32.totalorder %s52_s30, %s639_s13  ;;  %p645_p1 = scmp.lt.s32.totalorder %s639_s13, %s639_s13 }
  0x3e   :  { %p646_p2 = por %p645_p1, %p644_p0 }
  0x40   :  { %p647_p3 = pnand %p646_p2, %p640_p13 }
  0x42   :  { %650 = shalt.err (!%p647_p3)
}
  0x43   :  { %57 = dma.hbm_to_vmem [thread:$0]  %s807_s3, 4096, %s52_s30, [#allocation9], %s684_s0, %s684_s0, %s685_s21  }
  0x44   :  { %673 = dma.done.wait [#allocation3], 128  }
  0x45   :  { %674 = vsyncadd [#allocation3], 4294967168 }
  0x46   :  { %675 = dma.done.wait [#allocation6], 384  }
  0x47   :  { %676 = vsyncadd [#allocation6], 4294966912 }
  0x48   :  { %677 = dma.done.wait [#allocation9], 4096  }
  0x49   :  { %678 = vsyncadd [#allocation9], 4294963200  ;;  %v687_v0 = vmov 0.0|0.0   ;;  %vm688_vm0 = vmmov 0   ;;  %v689_v1 = vmov 0.0   ;;  %v75_v2 = vld [vmem:[#allocation7] sm:$0xff]  ;;  %v77_v45 = vlaneseq }
  0x4a   :  { %494 = vmatprep.subr.bf16.mxu0 %v687_v0  ;;  %421 = vmatprep.mubr.msk.f32.mxu0 %vm688_vm0, %v689_v1  ;;  %v76_v3 = vld [vmem:[#allocation7 + $0x8] sm:$0xff]  ;;  %v156_v5 = vld [vmem:[#allocation8] sm:$0xff]  ;;  %v157_v6 = vld [vmem:[#allocation8 + $0x8] sm:$0xff]  ;;  %vm81_vm1 = vcmask 130048  }
  0x4b   :  { %497 = vmatprep.subr.bf16.mxu1 %v687_v0  ;;  %456 = vmatprep.mubr.msk.f32.mxu1 %vm688_vm0, %v689_v1  ;;  %v495_v4 = vpack.c.bf16 %v76_v3, %v75_v2  ;;  %v158_v7 = vld [vmem:[#allocation8 + $0x10] sm:$0xff]  ;;  %v498_v8 = vpack.c.bf16 %v157_v6, %v156_v5  ;;  %v159_v9 = vld [vmem:[#allocation8 + $0x18] sm:$0xff]  ;;  %v72_v10 = vld [vmem:[#allocation2] sm:$0xff]  ;;  %v78_v46 = vshrl.u32 %v77_v45, 7 }
  0x4c   :  { %v501_v11 = vpack.c.bf16 %v159_v9, %v158_v7  ;;  %v160_v12 = vld [vmem:[#allocation8 + $0x20] sm:$0xff]  ;;  %v161_v13 = vld [vmem:[#allocation8 + $0x28] sm:$0xff]  ;;  %v162_v15 = vld [vmem:[#allocation8 + $0x30] sm:$0xff] }
  0x4d   :  { %496 = vmatpush3.bf16.msra.mxu0 %v495_v4  ;;  %499 = vmatpush3.bf16.msra.mxu1 %v498_v8  ;;  %v504_v14 = vpack.c.bf16 %v161_v13, %v160_v12  ;;  %v163_v16 = vld [vmem:[#allocation8 + $0x38] sm:$0xff]  ;;  %v164_v18 = vld [vmem:[#allocation8 + $0x40] sm:$0xff]  ;;  %v165_v19 = vld [vmem:[#allocation8 + $0x48] sm:$0xff]  ;;  %v79_v47 = vsub.s32 0, %v78_v46  ;;  %v174_v63 = vsub.s32 1, %v78_v46  ;;  %v266_v6 = vsub.s32 2, %v78_v46 }
  0x4e   :  { %521 = vmatprep.subr.bf16.mxu0 %v687_v0  ;;  %500 = vmatprep.subr.bf16.mxu1 %v687_v0  ;;  %v507_v17 = vpack.c.bf16 %v163_v16, %v162_v15  ;;  %v510_v20 = vpack.c.bf16 %v165_v19, %v164_v18  ;;  %v166_v21 = vld [vmem:[#allocation8 + $0x50] sm:$0xff]  ;;  %v167_v22 = vld [vmem:[#allocation8 + $0x58] sm:$0xff]  ;;  %v168_v24 = vld [vmem:[#allocation8 + $0x60] sm:$0xff] }
  0x4f   :  { %v513_v23 = vpack.c.bf16 %v167_v22, %v166_v21  ;;  %v169_v25 = vld [vmem:[#allocation8 + $0x68] sm:$0xff]  ;;  %v170_v27 = vld [vmem:[#allocation8 + $0x70] sm:$0xff]  ;;  %v171_v28 = vld [vmem:[#allocation8 + $0x78] sm:$0xff]  ;;  %v357_v21 = vand.u32 127, %v77_v45 }
  0x50   :  { %422 = vmatmul.mubr.msk.f32.vlgmr.msra.gmra.mrb[0].mxu0 %vm81_vm1, %v72_v10  ;;  %v516_v26 = vpack.c.bf16 %v169_v25, %v168_v24  ;;  %v519_v29 = vpack.c.bf16 %v171_v28, %v170_v27  ;;  %v248_v30 = vld [vmem:[#allocation8 + $0x80] sm:$0xff]  ;;  %v249_v31 = vld [vmem:[#allocation8 + $0x88] sm:$0xff]  ;;  %v250_v32 = vld [vmem:[#allocation8 + $0x90] sm:$0xff] }
  0x51   :  { %491 = vmatprep.mubr.msk.f32.mxu0 %vm688_vm0, %v689_v1  ;;  %502 = vmatpush3.bf16.msra.mxu1 %v501_v11  ;;  %v522_v33 = vpack.c.bf16 %v249_v31, %v248_v30  ;;  %v251_v34 = vld [vmem:[#allocation8 + $0x98] sm:$0xff]  ;;  %v252_v36 = vld [vmem:[#allocation8 + $0xa0] sm:$0xff]  ;;  %v253_v37 = vld [vmem:[#allocation8 + $0xa8] sm:$0xff]  ;;  %vm358_vm2 = vcmp.lt.s32.totalorder %v357_v21, 4 }
  0x52   :  { %503 = vmatprep.subr.bf16.mxu1 %v687_v0  ;;  %v525_v35 = vpack.c.bf16 %v251_v34, %v250_v32  ;;  %v528_v38 = vpack.c.bf16 %v253_v37, %v252_v36  ;;  %v254_v39 = vld [vmem:[#allocation8 + $0xb0] sm:$0xff]  ;;  %v255_v40 = vld [vmem:[#allocation8 + $0xb8] sm:$0xff]  ;;  %v256_v42 = vld [vmem:[#allocation8 + $0xc0] sm:$0xff] }
  0x53   :  { %523 = vmatpush3.bf16.msra.mxu0 %v522_v33  ;;  %v531_v41 = vpack.c.bf16 %v255_v40, %v254_v39  ;;  %v257_v43 = vld [vmem:[#allocation8 + $0xc8] sm:$0xff]  ;;  %v74_v48 = vld [vmem:[%s808_s4] sm:$0xf]  ;;  %v258_v54 = vld [vmem:[#allocation8 + $0xd0] sm:$0xff]  ;;  %s690_s4 = smov [#allocation10]  }
  0x54   :  { %524 = vmatprep.subr.bf16.mxu0 %v687_v0  ;;  %v534_v44 = vpack.c.bf16 %v257_v43, %v256_v42  ;;  %v80_v49 = vrot.slane %v74_v48, %v79_v47  ;;  %v259_v55 = vld [vmem:[#allocation8 + $0xd8] sm:$0xff]  ;;  %v260_v57 = vld [vmem:[#allocation8 + $0xe0] sm:$0xff]  ;;  %v261_v58 = vld [vmem:[#allocation8 + $0xe8] sm:$0xff]  ;;  %v175_v1 = vrot.slane %v74_v48, %v174_v63  ;;  %v339_v7 = vmul.f32 -2.0, %v74_v48  ;;  %s367_s15 = sshll.u32 %s690_s4, 4  ;;  %s368_s15 = int_to_ptr.vmem [resolvable:$true] %s367_s15 }
  0x55   :  { %505 = vmatpush3.bf16.msra.mxu1 %v504_v14  ;;  %v537_v56 = vpack.c.bf16 %v259_v55, %v258_v54  ;;  %v540_v59 = vpack.c.bf16 %v261_v58, %v260_v57  ;;  %v262_v60 = vld [vmem:[#allocation8 + $0xf0] sm:$0xff]  ;;  %v263_v61 = vld [vmem:[#allocation8 + $0xf8] sm:$0xff]  ;;  %v267_v8 = vrot.slane %v74_v48, %v266_v6  ;;  %v73_v13 = vld [vmem:[#allocation5] sm:$0xff]  ;;  %v347_v14 = vsub.s32 3, %v78_v46  ;;  %s651_s16 = scalar_lea.vmem %s368_s15, 128  ;;  %p656_p5 = scmp.lt.s32.totalorder %s368_s15, %s368_s15 }
  0x56   :  { %506 = vmatprep.subr.bf16.mxu1 %v687_v0  ;;  %v543_v62 = vpack.c.bf16 %v263_v61, %v262_v60  ;;  %v340_v9 = vmul.f32 1.442695, %v339_v7  ;;  %p652_p4 = scmp.ne.s32.totalorder %s368_s15, %s651_s16  ;;  %p657_p6 = scmp.lt.s32.totalorder %s651_s16, %s651_s16 }
  0x57   :  { %526 = vmatpush3.bf16.msra.mxu0 %v525_v35 }
  0x58   :  { %527 = vmatprep.subr.bf16.mxu0 %v687_v0  ;;  %p658_p7 = por %p657_p6, %p656_p5 }
  0x59   :  { %508 = vmatpush3.bf16.msra.mxu1 %v507_v17 }
  0x5a   :  { %509 = vmatprep.subr.bf16.mxu1 %v687_v0  ;;  %p659_p8 = pnand %p658_p7, %p652_p4 }
  0x5b   :  { %529 = vmatpush3.bf16.msra.mxu0 %v528_v38 }
  0x5c   :  { %530 = vmatprep.subr.bf16.mxu0 %v687_v0 }
  0x5d   :  { %511 = vmatpush3.bf16.msra.mxu1 %v510_v20  ;;  %v353_v20 = vrot.slane %v74_v48, %v347_v14 }
  0x5e   :  { %512 = vmatprep.subr.bf16.mxu1 %v687_v0 }
  0x5f   :  { %532 = vmatpush3.bf16.msra.mxu0 %v531_v41 }
  0x60   :  { %533 = vmatprep.subr.bf16.mxu0 %v687_v0 }
  0x61   :  { %514 = vmatpush3.bf16.msra.mxu1 %v513_v23 }
  0x62   :  { %515 = vmatprep.subr.bf16.mxu1 %v687_v0 }
  0x63   :  { %535 = vmatpush3.bf16.msra.mxu0 %v534_v44 }
  0x64   :  { %536 = vmatprep.subr.bf16.mxu0 %v687_v0 }
  0x65   :  { %517 = vmatpush3.bf16.msra.mxu1 %v516_v26 }
  0x66   :  { %518 = vmatprep.subr.bf16.mxu1 %v687_v0 }
  0x67   :  { %538 = vmatpush3.bf16.msra.mxu0 %v537_v56 }
  0x68   :  { %539 = vmatprep.subr.bf16.mxu0 %v687_v0 }
  0x69   :  { %520 = vmatpush3.bf16.msra.mxu1 %v519_v29 }
  0x6b   :  { %541 = vmatpush3.bf16.msra.mxu0 %v540_v59 }
  0x6c   :  { %542 = vmatprep.subr.bf16.mxu0 %v687_v0 }
  0x6f   :  { %544 = vmatpush3.bf16.msra.mxu0 %v543_v62 }
 0x123   :  { %v151_v50 = vpop.f32.mrb[0].mxu0 }
 0x124   :  { %v152_v51 = vadd.f32 %v151_v50, %v80_v49  ;;  %v423_v52 = vpop.f32.mrb[1].mxu0 }
 0x126   :  { %555 = vtanh.f32 %v152_v51 }
 0x130   :  { %v556_v53 = vpop.eup %555 }
 0x131   :  { %457 = vmatmul.mubr.f32.vlgmr.msra.gmra.mrb[0].mxu1 %v556_v53 }
 0x204   :  { %v242_v2 = vpop.f32.mrb[0].mxu1 }
 0x205   :  { %v243_v3 = vadd.f32 %v242_v2, %v175_v1  ;;  %v458_v4 = vpop.f32.mrb[1].mxu1 }
 0x207   :  { %557 = vtanh.f32 %v243_v3 }
 0x208   :  { %559 = vpow2.f32 %v340_v9 }
 0x211   :  { %v558_v5 = vpop.eup %557 }
 0x212   :  { %492 = vmatmul.mubr.f32.vlgmr.msra.gmra.mrb[2].mxu0 %v558_v5  ;;  %v560_v0 = vpop.eup %559 }
 0x213   :  { %v348_v18 = vrot.slane %v560_v0, %v347_v14 }
 0x2e5   :  { %v334_v10 = vpop.f32.mrb[2].mxu0 }
 0x2e6   :  { %v335_v11 = vadd.f32 %v334_v10, %v267_v8  ;;  %v493_v12 = vpop.f32.mrb[3].mxu0 }
 0x2e8   :  { %561 = vtanh.f32 %v335_v11 }
 0x2f2   :  { %v562_v15 = vpop.eup %561 }
 0x2f3   :  { %v342_v16 = vsub.f32 %v73_v13, %v562_v15 }
 0x2f5   :  { %v343_v17 = vmul.f32 -0.5, %v342_v16 }
 0x2f7   :  { %v344_v19 = vmul.f32 %v343_v17, %v342_v16 }
 0x2f9   :  { %v349_v22 = vmul.f32 %v348_v18, %v344_v19 }
 0x2fb   :  { %v354_v23 = vsub.f32 %v349_v22, %v353_v20 }
 0x2fd   :  { %v379_v24 = vadd.f32 -0.9189385, %v354_v23 }
 0x2ff   :  { %v359_v25 = vsel %vm358_vm2, %v379_v24, %v335_v11 }
 0x300   :  { %360 = vst [vmem:[#allocation10] sm:$0xff] %v359_v25 }
 0x301   :  { %662 = shalt.err (!%p659_p8)
}
 0x302   :  { %s663_s19 = scalar_lea.hbm %s809_s5, 128 }
 0x303   :  { %p664_p9 = scmp.ne.s32.totalorder %s809_s5, %s663_s19  ;;  %p667_p10 = scmp.lt.u32.totalorder %s663_s19, %s809_s5 }
 0x305   :  { %p669_p11 = pnand %p667_p10, %p664_p9 }
 0x307   :  { %672 = shalt.err (!%p669_p11)
}
 0x308   :  { %370 = dma.vmem_to_hbm [thread:$0]  %s368_s15, 128, %s809_s5, [#allocation4]  }
 0x309   :  { %679 = dma.done.wait [#allocation4], 128  }
 0x30a   :  { %680 = vsyncadd [#allocation4], 4294967168 }
 0x30b   :  { %374 = vsyncpa [#allocation3], 1 }
 0x30c   :  { %375 = vsyncpa [#allocation6], 1 }
 0x30d   :  { %376 = vsyncpa [#allocation9], 1 }
 0x30e   :  { %377 = vsyncpa [#allocation4], 1 }

</bundles_post_ra>
